<compile_context>
chip_gen: v7x
topology: tpu7x:2x2x1
jax: 0.10.0
libtpu: 0.0.40
codegen_flags: <defaults>
</compile_context>

<pallas_src>
import functools
import math

import jax
import jax.numpy as jnp
from jax import lax
from jax.experimental import pallas as pl
from jax.experimental.pallas import tpu as pltpu


# ---------------------------------------------------------------------------
# small helpers
# ---------------------------------------------------------------------------
def _round_up(x, m):
    return ((x + m - 1) // m) * m


_VMEM_LIMIT = 32 * 1024 * 1024


def _cparams(*sems):
    return pltpu.CompilerParams(dimension_semantics=sems,
                                vmem_limit_bytes=_VMEM_LIMIT)


# ---------------------------------------------------------------------------
# Pallas kernel 1: bf16 matmul + bias (+ optional fused LeakyReLU) -- conv hot path
# ---------------------------------------------------------------------------
def _mm_bias_kernel(x_ref, w_ref, b_ref, o_ref, *, leaky_slope):
    acc = jnp.dot(x_ref[...], w_ref[...], preferred_element_type=jnp.float32)
    acc = acc + b_ref[...]
    if leaky_slope is not None:
        acc = jnp.where(acc >= 0.0, acc, leaky_slope * acc)
    o_ref[...] = acc


@functools.partial(jax.jit, static_argnames=("leaky_slope",))
def matmul_bias_act(x, w, b, leaky_slope=None):
    """(M, K) bf16 @ (K, Cout) bf16 + b (f32), f32 accumulation, optional LeakyReLU."""
    M, K = x.shape
    Cout = w.shape[1]
    tile_m = min(512, _round_up(M, 16))
    M_pad = _round_up(M, tile_m)
    if M_pad != M:
        x = jnp.pad(x, ((0, M_pad - M), (0, 0)))
    kernel = functools.partial(_mm_bias_kernel, leaky_slope=leaky_slope)
    out = pl.pallas_call(
        kernel,
        out_shape=jax.ShapeDtypeStruct((M_pad, Cout), jnp.float32),
        grid=(M_pad // tile_m,),
        in_specs=[
            pl.BlockSpec((tile_m, K), lambda i: (i, 0)),
            pl.BlockSpec((K, Cout), lambda i: (0, 0)),
            pl.BlockSpec((1, Cout), lambda i: (0, 0)),
        ],
        out_specs=pl.BlockSpec((tile_m, Cout), lambda i: (i, 0)),
        compiler_params=_cparams("parallel"),
    )(x, w, b.reshape(1, Cout))
    return out[:M]


# ---------------------------------------------------------------------------
# Pallas kernel 2: InstanceNorm3d, lane-dense (N*C rows, spatial on lanes)
# (optionally fused residual add + LeakyReLU)
# ---------------------------------------------------------------------------
def _inorm_rows_kernel(x_ref, o_ref, *, n_valid, eps):
    x = x_ref[...]                                   # (rows_tile, S_pad), pads are zero
    inv_n = 1.0 / float(n_valid)
    mean = jnp.sum(x, axis=1, keepdims=True) * inv_n
    xc = x - mean
    if n_valid != x.shape[1]:
        mask = lax.broadcasted_iota(jnp.int32, x.shape, 1) < n_valid
        sq = jnp.where(mask, xc * xc, 0.0)
    else:
        sq = xc * xc
    var = jnp.sum(sq, axis=1, keepdims=True) * inv_n
    o_ref[...] = xc * lax.rsqrt(var + eps)


def _add_leaky_inorm_rows_kernel(a_ref, r_ref, o_ref, *, n_valid, eps, slope):
    x = a_ref[...] + r_ref[...]
    x = jnp.where(x >= 0.0, x, slope * x)
    inv_n = 1.0 / float(n_valid)
    mean = jnp.sum(x, axis=1, keepdims=True) * inv_n
    xc = x - mean
    if n_valid != x.shape[1]:
        mask = lax.broadcasted_iota(jnp.int32, x.shape, 1) < n_valid
        sq = jnp.where(mask, xc * xc, 0.0)
    else:
        sq = xc * xc
    var = jnp.sum(sq, axis=1, keepdims=True) * inv_n
    o_ref[...] = xc * lax.rsqrt(var + eps)


def _norm_rows_call(kernel, inputs, rows, S):
    rows_pad = _round_up(rows, 8)
    S_pad = _round_up(S, 128)
    padded = []
    for a in inputs:
        if rows_pad != rows or S_pad != S:
            a = jnp.pad(a, ((0, rows_pad - rows), (0, S_pad - S)))
        padded.append(a)
    row_tile = 8
    out = pl.pallas_call(
        kernel,
        out_shape=jax.ShapeDtypeStruct((rows_pad, S_pad), jnp.float32),
        grid=(rows_pad // row_tile,),
        in_specs=[pl.BlockSpec((row_tile, S_pad), lambda i: (i, 0))] * len(padded),
        out_specs=pl.BlockSpec((row_tile, S_pad), lambda i: (i, 0)),
        compiler_params=_cparams("parallel"),
    )(*padded)
    return out[:rows, :S]


@jax.jit
def instance_norm(x):
    """InstanceNorm3d: per (n, c) normalize over spatial, eps=1e-5, no affine."""
    N, D, H, W, C = x.shape
    S = D * H * W
    rows = N * C
    y = jnp.transpose(x.reshape(N, S, C), (0, 2, 1)).reshape(rows, S)
    kernel = functools.partial(_inorm_rows_kernel, n_valid=S, eps=1e-5)
    out = _norm_rows_call(kernel, [y], rows, S)
    return jnp.transpose(out.reshape(N, C, S), (0, 2, 1)).reshape(N, D, H, W, C)


@jax.jit
def add_leaky_instance_norm(x, res):
    """InstanceNorm3d(LeakyReLU(x + res, 0.2)) fused."""
    N, D, H, W, C = x.shape
    S = D * H * W
    rows = N * C
    to_rows = lambda a: jnp.transpose(a.reshape(N, S, C), (0, 2, 1)).reshape(rows, S)
    kernel = functools.partial(_add_leaky_inorm_rows_kernel, n_valid=S, eps=1e-5, slope=0.2)
    out = _norm_rows_call(kernel, [to_rows(x), to_rows(res)], rows, S)
    return jnp.transpose(out.reshape(N, C, S), (0, 2, 1)).reshape(N, D, H, W, C)


# ---------------------------------------------------------------------------
# Pallas kernels 3/4: lane-dense, tiled elementwise ops
# ---------------------------------------------------------------------------
def _gate_kernel(xin_ref, xcon_ref, win_ref, wcon_ref, o_ref):
    # softmax over two logits == sigmoid of their difference (stable, one exp)
    g = 1.0 / (1.0 + jnp.exp(wcon_ref[...] - win_ref[...]))
    xc = xcon_ref[...]
    o_ref[...] = xc + g * (xin_ref[...] - xc)


def _sample_kernel(m_ref, s_ref, n_ref, o_ref):
    o_ref[...] = m_ref[...] + jnp.exp(s_ref[...] * 0.5) * n_ref[...]


def _lane_dense(arrs):
    """Flatten arrays into (rows, 128) f32 slabs (lane-dense), padded with zeros."""
    total = arrs[0].size
    rows = -(-total // 128)
    rt = min(512, _round_up(rows, 8))
    rows_pad = _round_up(rows, rt)
    padded_total = rows_pad * 128
    out = []
    for a in arrs:
        f = a.reshape(-1).astype(jnp.float32)
        if padded_total != total:
            f = jnp.pad(f, (0, padded_total - total))
        out.append(f.reshape(rows_pad, 128))
    return out, rows_pad, rt, total


def _elementwise_call(kernel, arrs, shape):
    slabs, rows_pad, rt, total = _lane_dense(arrs)
    out = pl.pallas_call(
        kernel,
        out_shape=jax.ShapeDtypeStruct((rows_pad, 128), jnp.float32),
        grid=(rows_pad // rt,),
        in_specs=[pl.BlockSpec((rt, 128), lambda i: (i, 0))] * len(slabs),
        out_specs=pl.BlockSpec((rt, 128), lambda i: (i, 0)),
        compiler_params=_cparams("parallel"),
    )(*slabs)
    return out.reshape(-1)[:total].reshape(shape)


@jax.jit
def fusion_gate_combine(x_in, x_con, w_in, w_con):
    return _elementwise_call(_gate_kernel, [x_in, x_con, w_in, w_con], x_in.shape)


@jax.jit
def sample_svf(mean, log_sigma, noise):
    return _elementwise_call(_sample_kernel, [mean, log_sigma, noise], mean.shape)


# ---------------------------------------------------------------------------
# Conv3d ('same', stride 1) = im2col over a (possibly fused) tap set + Pallas matmul
# ---------------------------------------------------------------------------
def _offset_grid(kd, kh, kw, pads):
    pz, py, px = pads
    pd, ph, pw = kd // 2, kh // 2, kw // 2
    offs = []
    for z in range(kd):
        for y in range(kh):
            for x in range(kw):
                offs.append((z + pz - pd, y + py - ph, x + px - pw))
    return offs


def _weight_to_rows(w, offsets, pads):
    """PyTorch (Cout,Cin,kd,kh,kw) weight -> (T*Cin, Cout) rows over the union tap set."""
    Cout, Cin, kd, kh, kw = w.shape
    T = len(offsets)
    idx = {o: i for i, o in enumerate(offsets)}
    own = _offset_grid(kd, kh, kw, pads)
    w_t = jnp.transpose(w, (2, 3, 4, 1, 0)).reshape(kd * kh * kw, Cin, Cout)
    wm = jnp.zeros((T, Cin, Cout), jnp.float32)
    for j, o in enumerate(own):
        wm = wm.at[idx[o]].set(w_t[j])
    return wm.reshape(T * Cin, Cout)


def _prep_convs(convs):
    """Fuse convs that share the same input into one (K, sum(Cout)) bf16 matrix."""
    pads = tuple(max(int(c["w"].shape[2 + a]) // 2 for c in convs) for a in range(3))
    union = set()
    for c in convs:
        kd, kh, kw = (int(s) for s in c["w"].shape[2:])
        union.update(_offset_grid(kd, kh, kw, pads))
    offsets = tuple(sorted(union))
    wm = jnp.concatenate([_weight_to_rows(c["w"], offsets, pads) for c in convs], axis=1)
    K = wm.shape[0]
    K_pad = _round_up(K, 16)                      # aligned bf16 MXU feed (K padding)
    if K_pad != K:
        wm = jnp.pad(wm, ((0, K_pad - K), (0, 0)))
    b = jnp.concatenate([c["b"] for c in convs]).astype(jnp.float32)
    return {"wm": wm.astype(jnp.bfloat16), "b": b, "offsets": offsets, "pads": pads}


@functools.partial(jax.jit, static_argnames=("offsets", "pads", "leaky_slope"))
def conv_apply(x, wm, b, *, offsets, pads, leaky_slope=None):
    """x: (N,D,H,W,Cin) f32; wm: (K_pad, Cout) bf16 prepped; returns (N,D,H,W,Cout) f32."""
    N, D, H, W, Cin = x.shape
    Cout = wm.shape[1]
    M = N * D * H * W
    xb = x.astype(jnp.bfloat16)
    pz, py, px = pads
    if pz or py or px:
        xb = jnp.pad(xb, ((0, 0), (pz, pz), (py, py), (px, px), (0, 0)))
    if offsets == ((0, 0, 0),):
        patches = xb.reshape(M, Cin)
    else:
        taps = [lax.slice(xb, (0, oz, oy, ox, 0), (N, oz + D, oy + H, ox + W, Cin))
                for (oz, oy, ox) in offsets]
        patches = jnp.stack(taps, axis=4).reshape(M, len(offsets) * Cin)
    if patches.shape[1] != wm.shape[0]:
        patches = jnp.pad(patches, ((0, 0), (0, wm.shape[0] - patches.shape[1])))
    out = matmul_bias_act(patches, wm, b, leaky_slope=leaky_slope)
    return out.reshape(N, D, H, W, Cout)


def apply_conv(x, prep, leaky_slope=None):
    return conv_apply(x, prep["wm"], prep["b"], offsets=prep["offsets"],
                      pads=prep["pads"], leaky_slope=leaky_slope)


# ---------------------------------------------------------------------------
# JAX glue: pooling, trilinear resize, grid_sample, integration
# ---------------------------------------------------------------------------
def avg_pool3d_2x(x):
    N, D, H, W, C = x.shape
    D2, H2, W2 = D // 2, H // 2, W // 2
    x = x[:, :2 * D2, :2 * H2, :2 * W2, :]
    x = x.reshape(N, D2, 2, H2, 2, W2, 2, C)
    return x.mean(axis=(2, 4, 6))


@functools.partial(jax.jit, static_argnames=("out_dhw",))
def resize_trilinear(x, out_dhw):
    """Trilinear resize, align_corners=True (matches nn.Upsample / F.interpolate here)."""
    N, D, H, W, C = x.shape

    def axis_coords(n_in, n_out):
        if n_out == 1:
            return jnp.zeros((1,), jnp.float32)
        return jnp.arange(n_out, dtype=jnp.float32) * (float(n_in - 1) / float(n_out - 1))

    def interp_axis(arr, n_in, n_out, axis):
        c = axis_coords(n_in, n_out)
        lo = jnp.floor(c)
        frac = c - lo
        lo_i = jnp.clip(lo.astype(jnp.int32), 0, n_in - 1)
        hi_i = jnp.clip(lo_i + 1, 0, n_in - 1)
        a_lo = jnp.take(arr, lo_i, axis=axis)
        a_hi = jnp.take(arr, hi_i, axis=axis)
        shp = [1] * arr.ndim
        shp[axis] = n_out
        frac = frac.reshape(shp)
        return a_lo * (1.0 - frac) + a_hi * frac

    Do, Ho, Wo = out_dhw
    x = interp_axis(x, D, Do, 1)
    x = interp_axis(x, H, Ho, 2)
    x = interp_axis(x, W, Wo, 3)
    return x


def upsample2x(x):
    N, D, H, W, C = x.shape
    return resize_trilinear(x, (2 * D, 2 * H, 2 * W))


def identity_grid(D, H, W):
    z, y, x = jnp.meshgrid(jnp.arange(D, dtype=jnp.float32),
                           jnp.arange(H, dtype=jnp.float32),
                           jnp.arange(W, dtype=jnp.float32), indexing="ij")
    return jnp.stack([z, y, x], axis=-1)                    # (D,H,W,3)


@jax.jit
def grid_sample_3d(src, coords):
    """PyTorch grid_sample (trilinear, align_corners=True, zeros padding), absolute coords."""
    # TODO(synk): data-dependent trilinear gather stays in plain JAX (no Pallas DMA gather yet).
    N, D, H, W, C = src.shape
    cz, cy, cx = coords[..., 0], coords[..., 1], coords[..., 2]
    z0 = jnp.floor(cz)
    y0 = jnp.floor(cy)
    x0 = jnp.floor(cx)
    bidx = jnp.arange(N).reshape(N, 1, 1, 1)
    out = jnp.zeros(coords.shape[:-1] + (C,), src.dtype)
    for dz in (0, 1):
        zi = z0 + dz
        wz = (cz - z0) if dz == 1 else (1.0 - (cz - z0))
        for dy in (0, 1):
            yi = y0 + dy
            wy = (cy - y0) if dy == 1 else (1.0 - (cy - y0))
            for dx in (0, 1):
                xi = x0 + dx
                wx = (cx - x0) if dx == 1 else (1.0 - (cx - x0))
                valid = ((zi >= 0) & (zi <= D - 1) & (yi >= 0) & (yi <= H - 1)
                         & (xi >= 0) & (xi <= W - 1))
                zc = jnp.clip(zi, 0, D - 1).astype(jnp.int32)
                yc = jnp.clip(yi, 0, H - 1).astype(jnp.int32)
                xc = jnp.clip(xi, 0, W - 1).astype(jnp.int32)
                val = src[bidx, zc, yc, xc]
                w = (wz * wy * wx) * valid.astype(src.dtype)
                out = out + w[..., None] * val
    return out


@functools.partial(jax.jit, static_argnames=("steps",))
def integrate_svf(svf, steps=7):
    """Scaling-and-squaring integration of a stationary velocity field."""
    N, D, H, W, _ = svf.shape
    grid = identity_grid(D, H, W)[None]
    flow = svf / (2.0 ** steps)
    for _ in range(steps):
        flow = flow + grid_sample_3d(flow, grid + flow)
    return flow


@jax.jit
def spatial_transform(src, flow):
    N, D, H, W, _ = flow.shape
    grid = identity_grid(D, H, W)[None]
    return grid_sample_3d(src, grid + flow)


# ---------------------------------------------------------------------------
# Parameters (deterministic init, PyTorch-like) + block forward functions
# ---------------------------------------------------------------------------
def _conv_params(key, cout, cin, ksize):
    kd, kh, kw = ksize
    kw_key, kb_key = jax.random.split(key)
    fan_in = cin * kd * kh * kw
    bound = 1.0 / math.sqrt(fan_in)
    w = jax.random.uniform(kw_key, (cout, cin, kd, kh, kw), jnp.float32, -bound, bound)
    b = jax.random.uniform(kb_key, (cout,), jnp.float32, -bound, bound)
    return {"w": w, "b": b}


def init_conv_block(key, cin, cout):
    k1, k2 = jax.random.split(key)
    return {"conv1": _prep_convs([_conv_params(k1, cout, cin, (3, 3, 3))]),
            "conv2": _prep_convs([_conv_params(k2, cout, cout, (3, 3, 3))])}


def conv_block_fwd(p, x):
    x = apply_conv(x, p["conv1"], leaky_slope=0.2)
    x = instance_norm(x)
    x = apply_conv(x, p["conv2"], leaky_slope=0.2)
    return instance_norm(x)


def init_elk(key, c):
    ks = jax.random.split(key, 5)
    branches = [_conv_params(ks[0], c // 2, c, (3, 3, 3)),
                _conv_params(ks[1], c // 2, c, (5, 1, 1)),
                _conv_params(ks[2], c // 2, c, (1, 5, 1)),
                _conv_params(ks[3], c // 2, c, (1, 1, 5))]
    return {"branches": _prep_convs(branches),                 # fused 33-tap union kernel
            "proj": _prep_convs([_conv_params(ks[4], c, 2 * c, (1, 1, 1))])}


def elk_fwd(p, x_in):
    x = apply_conv(x_in, p["branches"])       # == cat([c1,c2,c3,c4]) in one matmul
    x = apply_conv(x, p["proj"])
    return add_leaky_instance_norm(x, x_in)   # (x + x_in) -> LeakyReLU -> InstanceNorm


def init_fusion_gate(key, c):
    ks = jax.random.split(key, 4)
    conv = _conv_params(ks[0], c, c, (3, 3, 3))
    conv_in = _conv_params(ks[1], c, 2 * c, (1, 1, 1))
    conv_in["w"] = jnp.zeros_like(conv_in["w"])        # nn.init.zeros_
    conv_con = _conv_params(ks[2], c, 2 * c, (1, 1, 1))
    conv_con["w"] = jnp.zeros_like(conv_con["w"])      # nn.init.zeros_
    return {"conv": _prep_convs([conv]),
            "gates": _prep_convs([conv_in, conv_con]),  # fused gate projections
            "elk": init_elk(ks[3], c)}


def fusion_gate_fwd(p, x_in, x1, x2):
    x = jnp.concatenate([x1, x2], axis=-1)
    x = apply_conv(x, p["conv"], leaky_slope=0.2)
    x_con = instance_norm(x)
    xcat = jnp.concatenate([x_in, x_con], axis=-1)
    gates = apply_conv(xcat, p["gates"])
    c = x_in.shape[-1]
    w_in, w_con = gates[..., :c], gates[..., c:]
    x = fusion_gate_combine(x_in, x_con, w_in, w_con)
    return elk_fwd(p["elk"], x)


def init_reg_head(key, c):
    ks = jax.random.split(key, 3)
    mean = {"w": 1e-5 * jax.random.normal(ks[1], (3, c, 3, 3, 3), jnp.float32),
            "b": jnp.zeros((3,), jnp.float32)}
    sigma = {"w": 1e-10 * jax.random.normal(ks[2], (3, c, 3, 3, 3), jnp.float32),
             "b": jnp.full((3,), -10.0, jnp.float32)}
    return {"conv": _prep_convs([_conv_params(ks[0], c, c, (3, 3, 3))]),
            "heads": _prep_convs([mean, sigma])}       # fused mean + log_sigma heads


def reg_head_fwd(p, x_in):
    x = apply_conv(x_in, p["conv"], leaky_slope=0.2)
    x = instance_norm(x)
    out = apply_conv(x, p["heads"])
    return out[..., :3], out[..., 3:]


def _unet_conv_specs(in_ch, cn):
    return [(in_ch, cn), (cn, 2 * cn), (2 * cn, 2 * cn), (2 * cn, 4 * cn),
            (4 * cn, 4 * cn), (8 * cn, 4 * cn), (6 * cn, 2 * cn), (4 * cn, 2 * cn)]


def init_single_path(key, in_ch, cn):
    specs = _unet_conv_specs(in_ch, cn)
    ks = jax.random.split(key, 8)
    return {"conv_%d" % (i + 1): init_conv_block(ks[i], ci, co)
            for i, (ci, co) in enumerate(specs)}


def single_path_fwd(p, x_in):
    x_1 = conv_block_fwd(p["conv_1"], x_in)
    x = avg_pool3d_2x(x_1)
    x_2 = conv_block_fwd(p["conv_2"], x)
    x = avg_pool3d_2x(x_2)
    x_3 = conv_block_fwd(p["conv_3"], x)
    x = avg_pool3d_2x(x_3)
    x_4 = conv_block_fwd(p["conv_4"], x)
    x = avg_pool3d_2x(x_4)
    x_5 = conv_block_fwd(p["conv_5"], x)
    x = upsample2x(x_5)
    x = jnp.concatenate([x, x_4], axis=-1)
    x_6 = conv_block_fwd(p["conv_6"], x)
    x = upsample2x(x_6)
    x = jnp.concatenate([x, x_3], axis=-1)
    x_7 = conv_block_fwd(p["conv_7"], x)
    x = upsample2x(x_7)
    x = jnp.concatenate([x, x_2], axis=-1)
    x_8 = conv_block_fwd(p["conv_8"], x)
    return [x_2, x_3, x_4, x_5, x_6, x_7, x_8]


def init_fusion_path(key, in_ch, cn):
    specs = _unet_conv_specs(in_ch, cn)
    fg_channels = [2 * cn, 2 * cn, 4 * cn, 4 * cn, 4 * cn, 2 * cn, 2 * cn]
    ks = jax.random.split(key, 16)
    params = {}
    for i, (ci, co) in enumerate(specs):
        params["conv_%d" % (i + 1)] = init_conv_block(ks[i], ci, co)
    for j, c in enumerate(fg_channels):
        params["FG_%d" % (j + 2)] = init_fusion_gate(ks[8 + j], c)
    params["reghead"] = init_reg_head(ks[15], 2 * cn)
    return params


def fusion_path_fwd(p, fix_vol, mov_vol, fix_feat, mov_feat):
    x_in = jnp.concatenate([fix_vol, mov_vol], axis=-1)
    x_1 = conv_block_fwd(p["conv_1"], x_in)
    x = avg_pool3d_2x(x_1)
    x = conv_block_fwd(p["conv_2"], x)
    x_2 = fusion_gate_fwd(p["FG_2"], x, fix_feat[0], mov_feat[0])
    x = avg_pool3d_2x(x_2)
    x = conv_block_fwd(p["conv_3"], x)
    x_3 = fusion_gate_fwd(p["FG_3"], x, fix_feat[1], mov_feat[1])
    x = avg_pool3d_2x(x_3)
    x = conv_block_fwd(p["conv_4"], x)
    x_4 = fusion_gate_fwd(p["FG_4"], x, fix_feat[2], mov_feat[2])
    x = avg_pool3d_2x(x_4)
    x = conv_block_fwd(p["conv_5"], x)
    x_5 = fusion_gate_fwd(p["FG_5"], x, fix_feat[3], mov_feat[3])
    x = upsample2x(x_5)
    x = jnp.concatenate([x, x_4], axis=-1)
    x = conv_block_fwd(p["conv_6"], x)
    x_6 = fusion_gate_fwd(p["FG_6"], x, fix_feat[4], mov_feat[4])
    x = upsample2x(x_6)
    x = jnp.concatenate([x, x_3], axis=-1)
    x = conv_block_fwd(p["conv_7"], x)
    x_7 = fusion_gate_fwd(p["FG_7"], x, fix_feat[5], mov_feat[5])
    x = upsample2x(x_7)
    x = jnp.concatenate([x, x_2], axis=-1)
    x = conv_block_fwd(p["conv_8"], x)
    x_8 = fusion_gate_fwd(p["FG_8"], x, fix_feat[6], mov_feat[6])
    return reg_head_fwd(p["reghead"], x_8)


def init_autofuse(key, in_channels=1, channel_num=4):
    k_sp, k_fp = jax.random.split(key)
    return {"single": init_single_path(k_sp, in_channels, channel_num),
            "fusion": init_fusion_path(k_fp, in_channels * 2, channel_num * 2)}


def autofuse_forward(params, fix_vol_ncdhw, mov_vol_ncdhw, noise_ndhwc):
    to_ndhwc = lambda a: jnp.transpose(a, (0, 2, 3, 4, 1))
    to_ncdhw = lambda a: jnp.transpose(a, (0, 4, 1, 2, 3))
    fix_vol = to_ndhwc(fix_vol_ncdhw)
    mov_vol = to_ndhwc(mov_vol_ncdhw)

    fix_feat = single_path_fwd(params["single"], fix_vol)
    mov_feat = single_path_fwd(params["single"], mov_vol)
    svf_mean, svf_log_sigma = fusion_path_fwd(params["fusion"], fix_vol, mov_vol,
                                              fix_feat, mov_feat)
    svf = sample_svf(svf_mean, svf_log_sigma, noise_ndhwc)
    flow = integrate_svf(svf, steps=7)
    # ResizeTransformer(resize_factor=2): scale values, then trilinear upsample x2
    N, Dh, Hh, Wh, _ = flow.shape
    flow = 2.0 * flow
    flow = resize_trilinear(flow, (2 * Dh, 2 * Hh, 2 * Wh))
    warp_vol = spatial_transform(mov_vol, flow)
    svf_params = jnp.concatenate([svf_mean, svf_log_sigma], axis=-1)
    return to_ncdhw(flow), to_ncdhw(svf_params), to_ncdhw(warp_vol)


# ---------------------------------------------------------------------------
if __name__ == "__main__":
    key = jax.random.PRNGKey(0)
    k_param, k_fix, k_mov, k_noise = jax.random.split(key, 4)

    N, D, H, W = 1, 32, 32, 32           # small volume (bottleneck stays > 1 voxel)
    in_channels, channel_num = 1, 4      # small channel count

    params = init_autofuse(k_param, in_channels=in_channels, channel_num=channel_num)

    fix_vol = jax.random.normal(k_fix, (N, in_channels, D, H, W), jnp.float32)
    mov_vol = jax.random.normal(k_mov, (N, in_channels, D, H, W), jnp.float32)
    # reparameterization noise for the SVF (half resolution, 3 channels), channels-last
    noise = jax.random.normal(k_noise, (N, D // 2, H // 2, W // 2, 3), jnp.float32)

    flow, svf_params, warp_vol = autofuse_forward(params, fix_vol, mov_vol, noise)
    jax.block_until_ready((flow, svf_params, warp_vol))

    assert flow.shape == (N, 3, D, H, W)
    assert svf_params.shape == (N, 6, D // 2, H // 2, W // 2)
    assert warp_vol.shape == (N, in_channels, D, H, W)
    print("KERNEL_OK")
</pallas_src>

<mosaic_0001>
module attributes {stable_mosaic.version = 11 : i64} {
  func.func @_mm_bias_kernel(%arg0: i32, %arg1: memref<512x32xbf16, #tpu.memory_space<vmem>>, %arg2: memref<32x4xbf16, #tpu.memory_space<vmem>>, %arg3: memref<1x4xf32, #tpu.memory_space<vmem>>, %arg4: memref<512x4xf32, #tpu.memory_space<vmem>>) attributes {dimension_semantics = [#tpu.dimension_semantics<parallel>], iteration_bounds = array<i64: 64>, scalar_prefetch = 0 : i64, scratch_operands = 0 : i64, tpu.core_type = #tpu.core_type<tc>, window_params = [{transform_indices = @transform_0, window_bounds = array<i64: 512, 32>}, {pipeline_mode = #tpu.pipeline_mode<synchronous>, transform_indices = @transform_1, window_bounds = array<i64: 32, 4>}, {pipeline_mode = #tpu.pipeline_mode<synchronous>, transform_indices = @transform_2, window_bounds = array<i64: 1, 4>}, {transform_indices = @transform_3, window_bounds = array<i64: 512, 4>}]} {
    %c0 = arith.constant 0 : index
    %c0_0 = arith.constant 0 : index
    %0 = vector.load %arg1[%c0, %c0_0] : memref<512x32xbf16, #tpu.memory_space<vmem>>, vector<512x32xbf16>
    %c0_1 = arith.constant 0 : index
    %c0_2 = arith.constant 0 : index
    %1 = vector.load %arg2[%c0_1, %c0_2] : memref<32x4xbf16, #tpu.memory_space<vmem>>, vector<32x4xbf16>
    %cst = arith.constant dense<0.000000e+00> : vector<512x4xf32>
    %2 = tpu.matmul %0, %1, %cst {dimension_numbers = #tpu.dot_dimension_numbers<[1], [0], [0], [1], [0, 0, 1, 1], [], []>} : vector<512x32xbf16>, vector<32x4xbf16>, vector<512x4xf32> -> vector<512x4xf32>
    %c0_3 = arith.constant 0 : index
    %c0_4 = arith.constant 0 : index
    %3 = vector.load %arg3[%c0_3, %c0_4] : memref<1x4xf32, #tpu.memory_space<vmem>>, vector<1x4xf32>
    %4 = vector.broadcast %3 : vector<1x4xf32> to vector<512x4xf32>
    %5 = arith.addf %2, %4 : vector<512x4xf32>
    %cst_5 = arith.constant 0.000000e+00 : f32
    %6 = vector.broadcast %cst_5 : f32 to vector<512x4xf32>
    %7 = arith.cmpf oge, %5, %6 : vector<512x4xf32>
    %cst_6 = arith.constant 2.000000e-01 : f32
    %8 = vector.broadcast %cst_6 : f32 to vector<512x4xf32>
    %9 = arith.mulf %8, %5 : vector<512x4xf32>
    %10 = arith.select %7, %5, %9 : vector<512x4xi1>, vector<512x4xf32>
    %c0_7 = arith.constant 0 : index
    %c0_8 = arith.constant 0 : index
    %11 = vector.load %arg4[%c0_7, %c0_8] : memref<512x4xf32, #tpu.memory_space<vmem>>, vector<512x4xf32>
    tpu.vector_store %arg4[%c0_7, %c0_8], %10 {strides = array<i32>} : memref<512x4xf32, #tpu.memory_space<vmem>>, vector<512x4xf32>,
    return
  }
  func.func @transform_0(%arg0: i32) -> (i32, i32) {
    %c0_i32 = arith.constant 0 : i32
    %c0_i32_0 = arith.constant 0 : i32
    return %arg0, %c0_i32 : i32, i32
  }
  func.func @transform_1(%arg0: i32) -> (i32, i32) {
    %c0_i32 = arith.constant 0 : i32
    %c0_i32_0 = arith.constant 0 : i32
    %c0_i32_1 = arith.constant 0 : i32
    return %c0_i32, %c0_i32_0 : i32, i32
  }
  func.func @transform_2(%arg0: i32) -> (i32, i32) {
    %c0_i32 = arith.constant 0 : i32
    %c0_i32_0 = arith.constant 0 : i32
    %c0_i32_1 = arith.constant 0 : i32
    return %c0_i32, %c0_i32_0 : i32, i32
  }
  func.func @transform_3(%arg0: i32) -> (i32, i32) {
    %c0_i32 = arith.constant 0 : i32
    %c0_i32_0 = arith.constant 0 : i32
    return %arg0, %c0_i32 : i32, i32
  }
}

</mosaic_0001>

<bundles_post_ra>
// kernel: matmul_bias_act.1
= control target key start
LH: loop header
LB: loop body
LE: loop exit
PB: predicated region body
PF: predicated region fallthrough
CT: control target
= control target key end

     0   :  { %s1375_s12 = smov 0   ;;  %s1667_s0 = inlined_call_operand.vmem [shape: bf16[32768,32], index: 0, kind: input, shape index: {}]   ;;  %s1668_s1 = inlined_call_operand.vmem [shape: bf16[32,4], index: 1, kind: input, shape index: {}]   ;;  %s1669_s2 = inlined_call_operand.vmem [shape: f32[1,4], index: 2, kind: input, shape index: {}]   ;;  %s1670_s3 = inlined_call_operand.vmem [shape: f32[32768,4], index: 3, kind: output, shape index: {}]  }
   0x1 LB: > { %s1121_s13 = sadd.s32 4294967295, %s1353_s12   ;;  %p1125_p0 = scmp.ge.s32.totalorder %s1353_s12, 1  ;;  %s1353_s12 = sphi %s1375_s12, %s13_s12  }
   0x2   : > { %p138_p1 = scmp.lt.s32.totalorder %s1353_s12, 65 }
   0x4   : > { %p139_p2 = pnand %p1125_p0, %p138_p1 }
   0x5   : > { %v1313_v0 = vld [vmem:[%s1668_s1] sm:$0xff] (!%p139_p2)   ;;  %s1126_s16 = sshll.u32 (!%p139_p2), %s1121_s13, 6  ;;  %v1314_v1 = vld [vmem:[%s1668_s1 + $0x8] sm:$0xff] (!%p139_p2)   ;;  %vm422_vm0 = vcmask (!%p139_p2), 261120   ;;  %vm1000_vm1 = vcmask (!%p139_p2), 31744  }
   0x6   : > { %142 = sbr.rel (%p139_p2) target bundleno = 299 (0x12b), region = 32  ;;  %p163_p3 = scmp.lt.s32.totalorder (!%p139_p2), %s1126_s16, 4095  ;;  %1233 = vmatprep.subr.bf16.mxu0 (!%p139_p2), %v1313_v0  ;;  %1301 = vmatprep.subr.bf16.mxu1 (!%p139_p2), %v1313_v0  ;;  %v1464_v34 = vld [vmem:[%s1669_s2] ss:$0 sm:$0xff] (!%p139_p2) }
   0x7   : > { %1234 = vmatpush3.bf16.msra.mxu0 (!%p139_p2), %v1313_v0  ;;  %1303 = vmatpush3.bf16.msra.mxu1 (!%p139_p2), %v1313_v0 }
   0x8   : > { %1235 = vmatprep.subr.bf16.mxu0 (!%p139_p2), %v1314_v1  ;;  %1302 = vmatprep.subr.bf16.mxu1 (!%p139_p2), %v1314_v1 }
   0xb   : > { %1236 = vmatpush3.bf16.msra.mxu0 (!%p139_p2), %v1314_v1  ;;  %1304 = vmatpush3.bf16.msra.mxu1 (!%p139_p2), %v1314_v1 }
   0xd   : > { %s1672_s16 = smov (!%p163_p3, %s1126_s16), 4095 }
   0xe   : > { %s1127_s19 = sshll.u32 %s1672_s16, 2  ;;  %s1129_s25 = sshll.u32 %s1672_s16, 3 }
   0xf   : > { %s1395_s22 = scalar_lea.vmem %s1667_s0, %s1127_s19  ;;  %s1473_s28 = scalar_lea.vmem %s1670_s3, %s1129_s25 }
  0x10   : > { %v1315_v2 = vld [vmem:[%s1395_s22] sm:$0xff]   ;;  %v1317_v4 = vld [vmem:[%s1395_s22 + $0x8] sm:$0xff]   ;;  %v1319_v6 = vld [vmem:[%s1395_s22 + $0x10] sm:$0xff]  }
  0x11   : > { %v1316_v3 = vld [vmem:[%s1395_s22 + $0x80] sm:$0xff]   ;;  %1237 = vmatprep.mubr.msk.bf16.mxu0 %vm422_vm0, %v1315_v2  ;;  %v1318_v5 = vld [vmem:[%s1395_s22 + $0x88] sm:$0xff]   ;;  %v1320_v7 = vld [vmem:[%s1395_s22 + $0x90] sm:$0xff]  }
  0x12   : > { %1269 = vmatprep.mubr.msk.bf16.mxu1 %vm422_vm0, %v1316_v3  ;;  %1238 = vmatmul.mubr.msk.bf16.vlgmr.msra.gmra.mrb[0].mxu0 %vm422_vm0, %v1317_v4  ;;  %v1321_v8 = vld [vmem:[%s1395_s22 + $0x18] sm:$0xff]   ;;  %v1323_v10 = vld [vmem:[%s1395_s22 + $0x20] sm:$0xff]   ;;  %v1325_v12 = vld [vmem:[%s1395_s22 + $0x28] sm:$0xff]  }
  0x13   : > { %1270 = vmatmul.mubr.msk.bf16.vlgmr.msra.gmra.mrb[0].mxu1 %vm422_vm0, %v1318_v5  ;;  %1241 = vmatprep.mubr.msk.bf16.mxu0 %vm422_vm0, %v1319_v6  ;;  %v1322_v9 = vld [vmem:[%s1395_s22 + $0x98] sm:$0xff]   ;;  %v1324_v11 = vld [vmem:[%s1395_s22 + $0xa0] sm:$0xff]   ;;  %v1326_v13 = vld [vmem:[%s1395_s22 + $0xa8] sm:$0xff]  }
  0x14   : > { %1273 = vmatprep.mubr.msk.bf16.mxu1 %vm422_vm0, %v1320_v7  ;;  %v1327_v14 = vld [vmem:[%s1395_s22 + $0x30] sm:$0xff]   ;;  %v1329_v16 = vld [vmem:[%s1395_s22 + $0x38] sm:$0xff]   ;;  %v1331_v18 = vld [vmem:[%s1395_s22 + $0x40] sm:$0xff]  }
  0x15   : > { %v1328_v15 = vld [vmem:[%s1395_s22 + $0xb0] sm:$0xff]   ;;  %v1330_v17 = vld [vmem:[%s1395_s22 + $0xb8] sm:$0xff]   ;;  %v1332_v19 = vld [vmem:[%s1395_s22 + $0xc0] sm:$0xff]  }
  0x16   : > { %v1333_v20 = vld [vmem:[%s1395_s22 + $0x48] sm:$0xff]   ;;  %v1335_v22 = vld [vmem:[%s1395_s22 + $0x50] sm:$0xff]   ;;  %v1337_v24 = vld [vmem:[%s1395_s22 + $0x58] sm:$0xff]  }
  0x17   : > { %v1334_v21 = vld [vmem:[%s1395_s22 + $0xc8] sm:$0xff]   ;;  %v1336_v23 = vld [vmem:[%s1395_s22 + $0xd0] sm:$0xff]   ;;  %v1338_v25 = vld [vmem:[%s1395_s22 + $0xd8] sm:$0xff]  }
  0x18   : > { %v1339_v26 = vld [vmem:[%s1395_s22 + $0x60] sm:$0xff]   ;;  %v1341_v28 = vld [vmem:[%s1395_s22 + $0x68] sm:$0xff]   ;;  %v1343_v30 = vld [vmem:[%s1395_s22 + $0x70] sm:$0xff]  }
  0x19   : > { %v1340_v27 = vld [vmem:[%s1395_s22 + $0xe0] sm:$0xff]   ;;  %v1342_v29 = vld [vmem:[%s1395_s22 + $0xe8] sm:$0xff]   ;;  %v1344_v31 = vld [vmem:[%s1395_s22 + $0xf0] sm:$0xff]  }
  0x1a   : > { %1242 = vmatmul.mubr.msk.bf16.gmra.mrb[4].mxu0 %vm422_vm0, %v1321_v8  ;;  %v1345_v32 = vld [vmem:[%s1395_s22 + $0x78] sm:$0xff]  }
  0x1b   : > { %1274 = vmatmul.mubr.msk.bf16.gmra.mrb[4].mxu1 %vm422_vm0, %v1322_v9  ;;  %1245 = vmatprep.mubr.msk.bf16.mxu0 %vm422_vm0, %v1323_v10  ;;  %v1346_v33 = vld [vmem:[%s1395_s22 + $0xf8] sm:$0xff]  }
  0x1c   : > { %1277 = vmatprep.mubr.msk.bf16.mxu1 %vm422_vm0, %v1324_v11 }
  0x22   : > { %1246 = vmatmul.mubr.msk.bf16.gmra.mrb[8].mxu0 %vm422_vm0, %v1325_v12 }
  0x23   : > { %1278 = vmatmul.mubr.msk.bf16.gmra.mrb[8].mxu1 %vm422_vm0, %v1326_v13  ;;  %1249 = vmatprep.mubr.msk.bf16.mxu0 %vm422_vm0, %v1327_v14 }
  0x24   : > { %1281 = vmatprep.mubr.msk.bf16.mxu1 %vm422_vm0, %v1328_v15 }
  0x2a   : > { %1250 = vmatmul.mubr.msk.bf16.gmra.mrb[12].mxu0 %vm422_vm0, %v1329_v16 }
  0x2b   : > { %1282 = vmatmul.mubr.msk.bf16.gmra.mrb[12].mxu1 %vm422_vm0, %v1330_v17  ;;  %1253 = vmatprep.mubr.msk.bf16.mxu0 %vm422_vm0, %v1331_v18 }
  0x2c   : > { %1285 = vmatprep.mubr.msk.bf16.mxu1 %vm422_vm0, %v1332_v19 }
  0x32   : > { %1254 = vmatmul.mubr.msk.bf16.gmra.mrb[16].mxu0 %vm422_vm0, %v1333_v20 }
  0x33   : > { %1286 = vmatmul.mubr.msk.bf16.gmra.mrb[16].mxu1 %vm422_vm0, %v1334_v21  ;;  %1257 = vmatprep.mubr.msk.bf16.mxu0 %vm422_vm0, %v1335_v22 }
  0x34   : > { %1289 = vmatprep.mubr.msk.bf16.mxu1 %vm422_vm0, %v1336_v23 }
  0x3a   : > { %1258 = vmatmul.mubr.msk.bf16.gmra.mrb[20].mxu0 %vm422_vm0, %v1337_v24 }
  0x3b   : > { %1290 = vmatmul.mubr.msk.bf16.gmra.mrb[20].mxu1 %vm422_vm0, %v1338_v25  ;;  %1261 = vmatprep.mubr.msk.bf16.mxu0 %vm422_vm0, %v1339_v26 }
  0x3c   : > { %1293 = vmatprep.mubr.msk.bf16.mxu1 %vm422_vm0, %v1340_v27 }
  0x42   : > { %1262 = vmatmul.mubr.msk.bf16.gmra.mrb[24].mxu0 %vm422_vm0, %v1341_v28 }
  0x43   : > { %1294 = vmatmul.mubr.msk.bf16.gmra.mrb[24].mxu1 %vm422_vm0, %v1342_v29  ;;  %1265 = vmatprep.mubr.msk.bf16.mxu0 %vm422_vm0, %v1343_v30 }
  0x44   : > { %1297 = vmatprep.mubr.msk.bf16.mxu1 %vm422_vm0, %v1344_v31 }
  0x4a   : > { %1266 = vmatmul.mubr.msk.bf16.gmra.mrb[28].mxu0 %vm422_vm0, %v1345_v32 }
  0x4b   : > { %1298 = vmatmul.mubr.msk.bf16.gmra.mrb[28].mxu1 %vm422_vm0, %v1346_v33 }
  0xe5   : > { %v1239_v35 = vpop.f32.mrb[0].mxu0 }
  0xe6   : > { %v562_v36 = vadd.f32 %v1239_v35, %v1464_v34  ;;  %v1271_v37 = vpop.f32.mrb[0].mxu1  ;;  %v553_v38 = vpop.f32.mrb[1].mxu0 }
  0xe7   : > { %v690_v39 = vadd.f32 %v1271_v37, %v1464_v34  ;;  %v554_v40 = vadd.f32 %v1464_v34, %v553_v38  ;;  %v681_v41 = vpop.f32.mrb[1].mxu1  ;;  %v1240_v42 = vpop.f32.mrb[2].mxu0 }
  0xe8   : > { %vm810_vm2 = vcmp.ge.f32.partialorder %v562_v36, 0.0  ;;  %v874_v43 = vmul.f32 0.2, %v562_v36  ;;  %v682_v44 = vadd.f32 %v1464_v34, %v681_v41  ;;  %v565_v45 = vadd.f32 %v1240_v42, %v1464_v34  ;;  %v1272_v46 = vpop.f32.mrb[2].mxu1  ;;  %v556_v47 = vpop.f32.mrb[3].mxu0 }
  0xe9   : > { %vm842_vm3 = vcmp.ge.f32.partialorder %v690_v39, 0.0  ;;  %v906_v48 = vmul.f32 0.2, %v690_v39  ;;  %vm808_vm4 = vcmp.ge.f32.partialorder %v554_v40, 0.0  ;;  %v872_v49 = vmul.f32 0.2, %v554_v40 }
  0xea   : > { %v938_v50 = vsel %vm810_vm2, %v562_v36, %v874_v43  ;;  %vm840_vm5 = vcmp.ge.f32.partialorder %v682_v44, 0.0  ;;  %v904_v51 = vmul.f32 0.2, %v682_v44  ;;  %vm811_vm6 = vcmp.ge.f32.partialorder %v565_v45, 0.0  ;;  %v684_v52 = vpop.f32.mrb[3].mxu1 }
  0xeb   : > { %1003 = vst.msk [vmem:[%s1473_s28 + $0x10] sm:$0xff] %vm1000_vm1, %v938_v50  ;;  %v970_v53 = vsel %vm842_vm3, %v690_v39, %v906_v48  ;;  %v936_v54 = vsel %vm808_vm4, %v554_v40, %v872_v49  ;;  %v875_v55 = vmul.f32 0.2, %v565_v45  ;;  %v693_v56 = vadd.f32 %v1272_v46, %v1464_v34 }
  0xec   : > { %1035 = vst.msk [vmem:[%s1473_s28 + $0x110] sm:$0xff] %vm1000_vm1, %v970_v53  ;;  %1001 = vst.msk [vmem:[%s1473_s28] sm:$0xff] %vm1000_vm1, %v936_v54  ;;  %v968_v57 = vsel %vm840_vm5, %v682_v44, %v904_v51  ;;  %v557_v58 = vadd.f32 %v1464_v34, %v556_v47  ;;  %v685_v59 = vadd.f32 %v1464_v34, %v684_v52 }
  0xed   : > { %1033 = vst.msk [vmem:[%s1473_s28 + $0x100] sm:$0xff] %vm1000_vm1, %v968_v57  ;;  %v939_v60 = vsel %vm811_vm6, %v565_v45, %v875_v55  ;;  %vm843_vm7 = vcmp.ge.f32.partialorder %v693_v56, 0.0  ;;  %v907_v61 = vmul.f32 0.2, %v693_v56  ;;  %v1243_v62 = vpop.f32.mrb[4].mxu0 }
  0xee   : > { %1004 = vst.msk [vmem:[%s1473_s28 + $0x18] sm:$0xff] %vm1000_vm1, %v939_v60  ;;  %vm809_vm8 = vcmp.ge.f32.partialorder %v557_v58, 0.0  ;;  %v873_v63 = vmul.f32 0.2, %v557_v58  ;;  %vm841_vm9 = vcmp.ge.f32.partialorder %v685_v59, 0.0  ;;  %v578_v2 = vadd.f32 %v1243_v62, %v1464_v34  ;;  %v1275_v3 = vpop.f32.mrb[4].mxu1 }
  0xef   : > { %v905_v0 = vmul.f32 0.2, %v685_v59  ;;  %v971_v1 = vsel %vm843_vm7, %v693_v56, %v907_v61  ;;  %v569_v4 = vpop.f32.mrb[5].mxu0  ;;  %v706_v7 = vadd.f32 %v1275_v3, %v1464_v34  ;;  %v697_v9 = vpop.f32.mrb[5].mxu1 }
  0xf0   : > { %1036 = vst.msk [vmem:[%s1473_s28 + $0x118] sm:$0xff] %vm1000_vm1, %v971_v1  ;;  %v937_v5 = vsel %vm809_vm8, %v557_v58, %v873_v63  ;;  %v570_v8 = vadd.f32 %v1464_v34, %v569_v4  ;;  %v1244_v10 = vpop.f32.mrb[6].mxu0  ;;  %vm814_vm10 = vcmp.ge.f32.partialorder %v578_v2, 0.0  ;;  %v878_v11 = vmul.f32 0.2, %v578_v2  ;;  %v1276_v14 = vpop.f32.mrb[6].mxu1 }
  0xf1   : > { %v969_v6 = vsel %vm841_vm9, %v685_v59, %v905_v0  ;;  %1002 = vst.msk [vmem:[%s1473_s28 + $0x8] sm:$0xff] %vm1000_vm1, %v937_v5  ;;  %v698_v12 = vadd.f32 %v1464_v34, %v697_v9  ;;  %v581_v13 = vadd.f32 %v1244_v10, %v1464_v34  ;;  %v572_v15 = vpop.f32.mrb[7].mxu0  ;;  %vm846_vm11 = vcmp.ge.f32.partialorder %v706_v7, 0.0  ;;  %v700_v20 = vpop.f32.mrb[7].mxu1 }
  0xf2   : > { %1034 = vst.msk [vmem:[%s1473_s28 + $0x108] sm:$0xff] %vm1000_vm1, %v969_v6  ;;  %v910_v16 = vmul.f32 0.2, %v706_v7  ;;  %vm812_vm12 = vcmp.ge.f32.partialorder %v570_v8, 0.0  ;;  %v876_v17 = vmul.f32 0.2, %v570_v8  ;;  %v942_v18 = vsel %vm814_vm10, %v578_v2, %v878_v11 }
  0xf3   : > { %vm844_vm13 = vcmp.ge.f32.partialorder %v698_v12, 0.0  ;;  %v908_v19 = vmul.f32 0.2, %v698_v12  ;;  %vm815_vm14 = vcmp.ge.f32.partialorder %v581_v13, 0.0  ;;  %1007 = vst.msk [vmem:[%s1473_s28 + $0x30] sm:$0xff] %vm1000_vm1, %v942_v18  ;;  %v709_v24 = vadd.f32 %v1276_v14, %v1464_v34 }
  0xf4   : > { %v974_v21 = vsel %vm846_vm11, %v706_v7, %v910_v16  ;;  %v940_v22 = vsel %vm812_vm12, %v570_v8, %v876_v17  ;;  %v879_v23 = vmul.f32 0.2, %v581_v13  ;;  %v573_v26 = vadd.f32 %v1464_v34, %v572_v15 }
  0xf5   : > { %1039 = vst.msk [vmem:[%s1473_s28 + $0x130] sm:$0xff] %vm1000_vm1, %v974_v21  ;;  %1005 = vst.msk [vmem:[%s1473_s28 + $0x20] sm:$0xff] %vm1000_vm1, %v940_v22  ;;  %v972_v25 = vsel %vm844_vm13, %v698_v12, %v908_v19  ;;  %v701_v27 = vadd.f32 %v1464_v34, %v700_v20  ;;  %v1247_v28 = vpop.f32.mrb[8].mxu0  ;;  %vm847_vm15 = vcmp.ge.f32.partialorder %v709_v24, 0.0  ;;  %v911_v30 = vmul.f32 0.2, %v709_v24 }
  0xf6   : > { %1037 = vst.msk [vmem:[%s1473_s28 + $0x120] sm:$0xff] %vm1000_vm1, %v972_v25  ;;  %v943_v29 = vsel %vm815_vm14, %v581_v13, %v879_v23  ;;  %v594_v31 = vadd.f32 %v1247_v28, %v1464_v34  ;;  %v1279_v32 = vpop.f32.mrb[8].mxu1  ;;  %v585_v33 = vpop.f32.mrb[9].mxu0  ;;  %vm813_vm0 = vcmp.ge.f32.partialorder %v573_v26, 0.0  ;;  %v877_v35 = vmul.f32 0.2, %v573_v26 }
  0xf7   : > { %1008 = vst.msk [vmem:[%s1473_s28 + $0x38] sm:$0xff] %vm1000_vm1, %v943_v29  ;;  %vm845_vm2 = vcmp.ge.f32.partialorder %v701_v27, 0.0  ;;  %v909_v36 = vmul.f32 0.2, %v701_v27  ;;  %v975_v37 = vsel %vm847_vm15, %v709_v24, %v911_v30  ;;  %v722_v39 = vadd.f32 %v1279_v32, %v1464_v34  ;;  %v713_v40 = vpop.f32.mrb[9].mxu1  ;;  %v1248_v41 = vpop.f32.mrb[10].mxu0 }
  0xf8   : > { %vm818_vm3 = vcmp.ge.f32.partialorder %v594_v31, 0.0  ;;  %v882_v38 = vmul.f32 0.2, %v594_v31  ;;  %1040 = vst.msk [vmem:[%s1473_s28 + $0x138] sm:$0xff] %vm1000_vm1, %v975_v37  ;;  %v941_v42 = vsel %vm813_vm0, %v573_v26, %v877_v35  ;;  %v586_v44 = vadd.f32 %v1464_v34, %v585_v33  ;;  %v1280_v46 = vpop.f32.mrb[10].mxu1  ;;  %v588_v47 = vpop.f32.mrb[11].mxu0 }
  0xf9   : > { %v973_v43 = vsel %vm845_vm2, %v701_v27, %v909_v36  ;;  %v714_v45 = vadd.f32 %v1464_v34, %v713_v40  ;;  %1006 = vst.msk [vmem:[%s1473_s28 + $0x28] sm:$0xff] %vm1000_vm1, %v941_v42  ;;  %vm850_vm4 = vcmp.ge.f32.partialorder %v722_v39, 0.0  ;;  %v914_v49 = vmul.f32 0.2, %v722_v39  ;;  %v716_v51 = vpop.f32.mrb[11].mxu1 }
  0xfa   : > { %1038 = vst.msk [vmem:[%s1473_s28 + $0x128] sm:$0xff] %vm1000_vm1, %v973_v43  ;;  %v946_v48 = vsel %vm818_vm3, %v594_v31, %v882_v38  ;;  %v597_v50 = vadd.f32 %v1248_v41, %v1464_v34  ;;  %vm816_vm5 = vcmp.ge.f32.partialorder %v586_v44, 0.0  ;;  %v880_v52 = vmul.f32 0.2, %v586_v44 }
  0xfb   : > { %1011 = vst.msk [vmem:[%s1473_s28 + $0x50] sm:$0xff] %vm1000_vm1, %v946_v48  ;;  %vm848_vm6 = vcmp.ge.f32.partialorder %v714_v45, 0.0  ;;  %v912_v53 = vmul.f32 0.2, %v714_v45  ;;  %v978_v54 = vsel %vm850_vm4, %v722_v39, %v914_v49  ;;  %v725_v56 = vadd.f32 %v1280_v46, %v1464_v34 }
  0xfc   : > { %vm819_vm7 = vcmp.ge.f32.partialorder %v597_v50, 0.0  ;;  %v883_v55 = vmul.f32 0.2, %v597_v50  ;;  %1043 = vst.msk [vmem:[%s1473_s28 + $0x150] sm:$0xff] %vm1000_vm1, %v978_v54  ;;  %v944_v57 = vsel %vm816_vm5, %v586_v44, %v880_v52  ;;  %v589_v59 = vadd.f32 %v1464_v34, %v588_v47 }
  0xfd   : > { %v976_v58 = vsel %vm848_vm6, %v714_v45, %v912_v53  ;;  %v717_v60 = vadd.f32 %v1464_v34, %v716_v51  ;;  %v1251_v61 = vpop.f32.mrb[12].mxu0  ;;  %1009 = vst.msk [vmem:[%s1473_s28 + $0x40] sm:$0xff] %vm1000_vm1, %v944_v57  ;;  %vm851_vm8 = vcmp.ge.f32.partialorder %v725_v56, 0.0  ;;  %v915_v63 = vmul.f32 0.2, %v725_v56 }
  0xfe   : > { %1041 = vst.msk [vmem:[%s1473_s28 + $0x140] sm:$0xff] %vm1000_vm1, %v976_v58  ;;  %v947_v62 = vsel %vm819_vm7, %v597_v50, %v883_v55  ;;  %v610_v0 = vadd.f32 %v1251_v61, %v1464_v34  ;;  %v1283_v1 = vpop.f32.mrb[12].mxu1  ;;  %v601_v2 = vpop.f32.mrb[13].mxu0  ;;  %vm817_vm9 = vcmp.ge.f32.partialorder %v589_v59, 0.0  ;;  %v881_v3 = vmul.f32 0.2, %v589_v59 }
  0xff   : > { %1012 = vst.msk [vmem:[%s1473_s28 + $0x58] sm:$0xff] %vm1000_vm1, %v947_v62  ;;  %vm849_vm10 = vcmp.ge.f32.partialorder %v717_v60, 0.0  ;;  %v913_v4 = vmul.f32 0.2, %v717_v60  ;;  %v979_v5 = vsel %vm851_vm8, %v725_v56, %v915_v63  ;;  %v738_v7 = vadd.f32 %v1283_v1, %v1464_v34  ;;  %v729_v8 = vpop.f32.mrb[13].mxu1  ;;  %v1252_v9 = vpop.f32.mrb[14].mxu0 }
 0x100   : > { %vm822_vm11 = vcmp.ge.f32.partialorder %v610_v0, 0.0  ;;  %v886_v6 = vmul.f32 0.2, %v610_v0  ;;  %1044 = vst.msk [vmem:[%s1473_s28 + $0x158] sm:$0xff] %vm1000_vm1, %v979_v5  ;;  %v945_v10 = vsel %vm817_vm9, %v589_v59, %v881_v3  ;;  %v602_v12 = vadd.f32 %v1464_v34, %v601_v2  ;;  %v1284_v14 = vpop.f32.mrb[14].mxu1  ;;  %v604_v15 = vpop.f32.mrb[15].mxu0 }
 0x101   : > { %v977_v11 = vsel %vm849_vm10, %v717_v60, %v913_v4  ;;  %v730_v13 = vadd.f32 %v1464_v34, %v729_v8  ;;  %1010 = vst.msk [vmem:[%s1473_s28 + $0x48] sm:$0xff] %vm1000_vm1, %v945_v10  ;;  %vm854_vm12 = vcmp.ge.f32.partialorder %v738_v7, 0.0  ;;  %v918_v17 = vmul.f32 0.2, %v738_v7  ;;  %v732_v19 = vpop.f32.mrb[15].mxu1 }
 0x102   : > { %1042 = vst.msk [vmem:[%s1473_s28 + $0x148] sm:$0xff] %vm1000_vm1, %v977_v11  ;;  %v950_v16 = vsel %vm822_vm11, %v610_v0, %v886_v6  ;;  %v613_v18 = vadd.f32 %v1252_v9, %v1464_v34  ;;  %vm820_vm13 = vcmp.ge.f32.partialorder %v602_v12, 0.0  ;;  %v884_v20 = vmul.f32 0.2, %v602_v12 }
 0x103   : > { %1015 = vst.msk [vmem:[%s1473_s28 + $0x70] sm:$0xff] %vm1000_vm1, %v950_v16  ;;  %vm852_vm14 = vcmp.ge.f32.partialorder %v730_v13, 0.0  ;;  %v916_v21 = vmul.f32 0.2, %v730_v13  ;;  %v982_v22 = vsel %vm854_vm12, %v738_v7, %v918_v17  ;;  %v741_v24 = vadd.f32 %v1284_v14, %v1464_v34 }
 0x104   : > { %vm823_vm15 = vcmp.ge.f32.partialorder %v613_v18, 0.0  ;;  %v887_v23 = vmul.f32 0.2, %v613_v18  ;;  %1047 = vst.msk [vmem:[%s1473_s28 + $0x170] sm:$0xff] %vm1000_vm1, %v982_v22  ;;  %v948_v25 = vsel %vm820_vm13, %v602_v12, %v884_v20  ;;  %v605_v27 = vadd.f32 %v1464_v34, %v604_v15 }
 0x105   : > { %v980_v26 = vsel %vm852_vm14, %v730_v13, %v916_v21  ;;  %v733_v28 = vadd.f32 %v1464_v34, %v732_v19  ;;  %v1255_v29 = vpop.f32.mrb[16].mxu0  ;;  %1013 = vst.msk [vmem:[%s1473_s28 + $0x60] sm:$0xff] %vm1000_vm1, %v948_v25  ;;  %vm855_vm0 = vcmp.ge.f32.partialorder %v741_v24, 0.0  ;;  %v919_v31 = vmul.f32 0.2, %v741_v24 }
 0x106   : > { %1045 = vst.msk [vmem:[%s1473_s28 + $0x160] sm:$0xff] %vm1000_vm1, %v980_v26  ;;  %v951_v30 = vsel %vm823_vm15, %v613_v18, %v887_v23  ;;  %v626_v32 = vadd.f32 %v1255_v29, %v1464_v34  ;;  %v1287_v33 = vpop.f32.mrb[16].mxu1  ;;  %v617_v35 = vpop.f32.mrb[17].mxu0  ;;  %vm821_vm2 = vcmp.ge.f32.partialorder %v605_v27, 0.0  ;;  %v885_v36 = vmul.f32 0.2, %v605_v27 }
 0x107   : > { %1016 = vst.msk [vmem:[%s1473_s28 + $0x78] sm:$0xff] %vm1000_vm1, %v951_v30  ;;  %vm853_vm3 = vcmp.ge.f32.partialorder %v733_v28, 0.0  ;;  %v917_v37 = vmul.f32 0.2, %v733_v28  ;;  %v983_v38 = vsel %vm855_vm0, %v741_v24, %v919_v31  ;;  %v754_v40 = vadd.f32 %v1287_v33, %v1464_v34  ;;  %v745_v41 = vpop.f32.mrb[17].mxu1  ;;  %v1256_v42 = vpop.f32.mrb[18].mxu0 }
 0x108   : > { %vm826_vm4 = vcmp.ge.f32.partialorder %v626_v32, 0.0  ;;  %v890_v39 = vmul.f32 0.2, %v626_v32  ;;  %1048 = vst.msk [vmem:[%s1473_s28 + $0x178] sm:$0xff] %vm1000_vm1, %v983_v38  ;;  %v949_v43 = vsel %vm821_vm2, %v605_v27, %v885_v36  ;;  %v618_v45 = vadd.f32 %v1464_v34, %v617_v35  ;;  %v1288_v47 = vpop.f32.mrb[18].mxu1  ;;  %v620_v48 = vpop.f32.mrb[19].mxu0 }
 0x109   : > { %v981_v44 = vsel %vm853_vm3, %v733_v28, %v917_v37  ;;  %v746_v46 = vadd.f32 %v1464_v34, %v745_v41  ;;  %1014 = vst.msk [vmem:[%s1473_s28 + $0x68] sm:$0xff] %vm1000_vm1, %v949_v43  ;;  %vm858_vm5 = vcmp.ge.f32.partialorder %v754_v40, 0.0  ;;  %v922_v50 = vmul.f32 0.2, %v754_v40  ;;  %v748_v52 = vpop.f32.mrb[19].mxu1 }
 0x10a   : > { %1046 = vst.msk [vmem:[%s1473_s28 + $0x168] sm:$0xff] %vm1000_vm1, %v981_v44  ;;  %v954_v49 = vsel %vm826_vm4, %v626_v32, %v890_v39  ;;  %v629_v51 = vadd.f32 %v1256_v42, %v1464_v34  ;;  %vm824_vm6 = vcmp.ge.f32.partialorder %v618_v45, 0.0  ;;  %v888_v53 = vmul.f32 0.2, %v618_v45 }
 0x10b   : > { %1019 = vst.msk [vmem:[%s1473_s28 + $0x90] sm:$0xff] %vm1000_vm1, %v954_v49  ;;  %vm856_vm7 = vcmp.ge.f32.partialorder %v746_v46, 0.0  ;;  %v920_v54 = vmul.f32 0.2, %v746_v46  ;;  %v986_v55 = vsel %vm858_vm5, %v754_v40, %v922_v50  ;;  %v757_v57 = vadd.f32 %v1288_v47, %v1464_v34 }
 0x10c   : > { %vm827_vm8 = vcmp.ge.f32.partialorder %v629_v51, 0.0  ;;  %v891_v56 = vmul.f32 0.2, %v629_v51  ;;  %1051 = vst.msk [vmem:[%s1473_s28 + $0x190] sm:$0xff] %vm1000_vm1, %v986_v55  ;;  %v952_v58 = vsel %vm824_vm6, %v618_v45, %v888_v53  ;;  %v621_v60 = vadd.f32 %v1464_v34, %v620_v48 }
 0x10d   : > { %v984_v59 = vsel %vm856_vm7, %v746_v46, %v920_v54  ;;  %v749_v61 = vadd.f32 %v1464_v34, %v748_v52  ;;  %v1259_v62 = vpop.f32.mrb[20].mxu0  ;;  %1017 = vst.msk [vmem:[%s1473_s28 + $0x80] sm:$0xff] %vm1000_vm1, %v952_v58  ;;  %vm859_vm9 = vcmp.ge.f32.partialorder %v757_v57, 0.0  ;;  %v923_v0 = vmul.f32 0.2, %v757_v57 }
 0x10e   : > { %1049 = vst.msk [vmem:[%s1473_s28 + $0x180] sm:$0xff] %vm1000_vm1, %v984_v59  ;;  %v955_v63 = vsel %vm827_vm8, %v629_v51, %v891_v56  ;;  %v642_v1 = vadd.f32 %v1259_v62, %v1464_v34  ;;  %v1291_v2 = vpop.f32.mrb[20].mxu1  ;;  %v633_v3 = vpop.f32.mrb[21].mxu0  ;;  %vm825_vm10 = vcmp.ge.f32.partialorder %v621_v60, 0.0  ;;  %v889_v4 = vmul.f32 0.2, %v621_v60 }
 0x10f   : > { %1020 = vst.msk [vmem:[%s1473_s28 + $0x98] sm:$0xff] %vm1000_vm1, %v955_v63  ;;  %vm857_vm11 = vcmp.ge.f32.partialorder %v749_v61, 0.0  ;;  %v921_v5 = vmul.f32 0.2, %v749_v61  ;;  %v987_v6 = vsel %vm859_vm9, %v757_v57, %v923_v0  ;;  %v770_v8 = vadd.f32 %v1291_v2, %v1464_v34  ;;  %v761_v9 = vpop.f32.mrb[21].mxu1  ;;  %v1260_v10 = vpop.f32.mrb[22].mxu0 }
 0x110   : > { %vm830_vm12 = vcmp.ge.f32.partialorder %v642_v1, 0.0  ;;  %v894_v7 = vmul.f32 0.2, %v642_v1  ;;  %1052 = vst.msk [vmem:[%s1473_s28 + $0x198] sm:$0xff] %vm1000_vm1, %v987_v6  ;;  %v953_v11 = vsel %vm825_vm10, %v621_v60, %v889_v4  ;;  %v634_v13 = vadd.f32 %v1464_v34, %v633_v3  ;;  %v1292_v15 = vpop.f32.mrb[22].mxu1  ;;  %v636_v16 = vpop.f32.mrb[23].mxu0 }
 0x111   : > { %v985_v12 = vsel %vm857_vm11, %v749_v61, %v921_v5  ;;  %v762_v14 = vadd.f32 %v1464_v34, %v761_v9  ;;  %1018 = vst.msk [vmem:[%s1473_s28 + $0x88] sm:$0xff] %vm1000_vm1, %v953_v11  ;;  %vm862_vm13 = vcmp.ge.f32.partialorder %v770_v8, 0.0  ;;  %v926_v18 = vmul.f32 0.2, %v770_v8  ;;  %v764_v20 = vpop.f32.mrb[23].mxu1 }
 0x112   : > { %1050 = vst.msk [vmem:[%s1473_s28 + $0x188] sm:$0xff] %vm1000_vm1, %v985_v12  ;;  %v958_v17 = vsel %vm830_vm12, %v642_v1, %v894_v7  ;;  %v645_v19 = vadd.f32 %v1260_v10, %v1464_v34  ;;  %vm828_vm14 = vcmp.ge.f32.partialorder %v634_v13, 0.0  ;;  %v892_v21 = vmul.f32 0.2, %v634_v13 }
 0x113   : > { %1023 = vst.msk [vmem:[%s1473_s28 + $0xb0] sm:$0xff] %vm1000_vm1, %v958_v17  ;;  %vm860_vm15 = vcmp.ge.f32.partialorder %v762_v14, 0.0  ;;  %v924_v22 = vmul.f32 0.2, %v762_v14  ;;  %v990_v23 = vsel %vm862_vm13, %v770_v8, %v926_v18  ;;  %v773_v25 = vadd.f32 %v1292_v15, %v1464_v34 }
 0x114   : > { %vm831_vm0 = vcmp.ge.f32.partialorder %v645_v19, 0.0  ;;  %v895_v24 = vmul.f32 0.2, %v645_v19  ;;  %1055 = vst.msk [vmem:[%s1473_s28 + $0x1b0] sm:$0xff] %vm1000_vm1, %v990_v23  ;;  %v956_v26 = vsel %vm828_vm14, %v634_v13, %v892_v21  ;;  %v637_v28 = vadd.f32 %v1464_v34, %v636_v16 }
 0x115   : > { %v988_v27 = vsel %vm860_vm15, %v762_v14, %v924_v22  ;;  %v765_v29 = vadd.f32 %v1464_v34, %v764_v20  ;;  %v1263_v30 = vpop.f32.mrb[24].mxu0  ;;  %1021 = vst.msk [vmem:[%s1473_s28 + $0xa0] sm:$0xff] %vm1000_vm1, %v956_v26  ;;  %vm863_vm2 = vcmp.ge.f32.partialorder %v773_v25, 0.0  ;;  %v927_v32 = vmul.f32 0.2, %v773_v25 }
 0x116   : > { %1053 = vst.msk [vmem:[%s1473_s28 + $0x1a0] sm:$0xff] %vm1000_vm1, %v988_v27  ;;  %v959_v31 = vsel %vm831_vm0, %v645_v19, %v895_v24  ;;  %v658_v33 = vadd.f32 %v1263_v30, %v1464_v34  ;;  %v1295_v35 = vpop.f32.mrb[24].mxu1  ;;  %v649_v36 = vpop.f32.mrb[25].mxu0  ;;  %vm829_vm3 = vcmp.ge.f32.partialorder %v637_v28, 0.0  ;;  %v893_v37 = vmul.f32 0.2, %v637_v28 }
 0x117   : > { %1024 = vst.msk [vmem:[%s1473_s28 + $0xb8] sm:$0xff] %vm1000_vm1, %v959_v31  ;;  %vm861_vm4 = vcmp.ge.f32.partialorder %v765_v29, 0.0  ;;  %v925_v38 = vmul.f32 0.2, %v765_v29  ;;  %v991_v39 = vsel %vm863_vm2, %v773_v25, %v927_v32  ;;  %v786_v41 = vadd.f32 %v1295_v35, %v1464_v34  ;;  %v777_v42 = vpop.f32.mrb[25].mxu1  ;;  %v1264_v43 = vpop.f32.mrb[26].mxu0 }
 0x118   : > { %vm834_vm5 = vcmp.ge.f32.partialorder %v658_v33, 0.0  ;;  %v898_v40 = vmul.f32 0.2, %v658_v33  ;;  %1056 = vst.msk [vmem:[%s1473_s28 + $0x1b8] sm:$0xff] %vm1000_vm1, %v991_v39  ;;  %v957_v44 = vsel %vm829_vm3, %v637_v28, %v893_v37  ;;  %v650_v46 = vadd.f32 %v1464_v34, %v649_v36  ;;  %v1296_v48 = vpop.f32.mrb[26].mxu1  ;;  %v652_v49 = vpop.f32.mrb[27].mxu0 }
 0x119   : > { %v989_v45 = vsel %vm861_vm4, %v765_v29, %v925_v38  ;;  %v778_v47 = vadd.f32 %v1464_v34, %v777_v42  ;;  %1022 = vst.msk [vmem:[%s1473_s28 + $0xa8] sm:$0xff] %vm1000_vm1, %v957_v44  ;;  %vm866_vm6 = vcmp.ge.f32.partialorder %v786_v41, 0.0  ;;  %v930_v51 = vmul.f32 0.2, %v786_v41  ;;  %v780_v53 = vpop.f32.mrb[27].mxu1 }
 0x11a   : > { %1054 = vst.msk [vmem:[%s1473_s28 + $0x1a8] sm:$0xff] %vm1000_vm1, %v989_v45  ;;  %v962_v50 = vsel %vm834_vm5, %v658_v33, %v898_v40  ;;  %v661_v52 = vadd.f32 %v1264_v43, %v1464_v34  ;;  %vm832_vm7 = vcmp.ge.f32.partialorder %v650_v46, 0.0  ;;  %v896_v54 = vmul.f32 0.2, %v650_v46 }
 0x11b   : > { %1027 = vst.msk [vmem:[%s1473_s28 + $0xd0] sm:$0xff] %vm1000_vm1, %v962_v50  ;;  %vm864_vm8 = vcmp.ge.f32.partialorder %v778_v47, 0.0  ;;  %v928_v55 = vmul.f32 0.2, %v778_v47  ;;  %v994_v56 = vsel %vm866_vm6, %v786_v41, %v930_v51  ;;  %v789_v58 = vadd.f32 %v1296_v48, %v1464_v34 }
 0x11c   : > { %vm835_vm9 = vcmp.ge.f32.partialorder %v661_v52, 0.0  ;;  %v899_v57 = vmul.f32 0.2, %v661_v52  ;;  %1059 = vst.msk [vmem:[%s1473_s28 + $0x1d0] sm:$0xff] %vm1000_vm1, %v994_v56  ;;  %v960_v59 = vsel %vm832_vm7, %v650_v46, %v896_v54  ;;  %v653_v61 = vadd.f32 %v1464_v34, %v652_v49 }
 0x11d   : > { %v992_v60 = vsel %vm864_vm8, %v778_v47, %v928_v55  ;;  %v781_v62 = vadd.f32 %v1464_v34, %v780_v53  ;;  %v1267_v63 = vpop.f32.mrb[28].mxu0  ;;  %1025 = vst.msk [vmem:[%s1473_s28 + $0xc0] sm:$0xff] %vm1000_vm1, %v960_v59  ;;  %vm867_vm10 = vcmp.ge.f32.partialorder %v789_v58, 0.0  ;;  %v931_v1 = vmul.f32 0.2, %v789_v58 }
 0x11e   : > { %1057 = vst.msk [vmem:[%s1473_s28 + $0x1c0] sm:$0xff] %vm1000_vm1, %v992_v60  ;;  %v963_v0 = vsel %vm835_vm9, %v661_v52, %v899_v57  ;;  %v674_v2 = vadd.f32 %v1267_v63, %v1464_v34  ;;  %v1299_v3 = vpop.f32.mrb[28].mxu1  ;;  %v665_v4 = vpop.f32.mrb[29].mxu0  ;;  %vm833_vm11 = vcmp.ge.f32.partialorder %v653_v61, 0.0  ;;  %v897_v5 = vmul.f32 0.2, %v653_v61 }
 0x11f   : > { %1028 = vst.msk [vmem:[%s1473_s28 + $0xd8] sm:$0xff] %vm1000_vm1, %v963_v0  ;;  %vm865_vm12 = vcmp.ge.f32.partialorder %v781_v62, 0.0  ;;  %v929_v6 = vmul.f32 0.2, %v781_v62  ;;  %v995_v7 = vsel %vm867_vm10, %v789_v58, %v931_v1  ;;  %v802_v9 = vadd.f32 %v1299_v3, %v1464_v34  ;;  %v793_v10 = vpop.f32.mrb[29].mxu1  ;;  %v1268_v11 = vpop.f32.mrb[30].mxu0 }
 0x120   : > { %vm838_vm13 = vcmp.ge.f32.partialorder %v674_v2, 0.0  ;;  %v902_v8 = vmul.f32 0.2, %v674_v2  ;;  %1060 = vst.msk [vmem:[%s1473_s28 + $0x1d8] sm:$0xff] %vm1000_vm1, %v995_v7  ;;  %v961_v12 = vsel %vm833_vm11, %v653_v61, %v897_v5  ;;  %v666_v14 = vadd.f32 %v1464_v34, %v665_v4  ;;  %v1300_v16 = vpop.f32.mrb[30].mxu1  ;;  %v668_v17 = vpop.f32.mrb[31].mxu0 }
 0x121   : > { %v993_v13 = vsel %vm865_vm12, %v781_v62, %v929_v6  ;;  %v794_v15 = vadd.f32 %v1464_v34, %v793_v10  ;;  %1026 = vst.msk [vmem:[%s1473_s28 + $0xc8] sm:$0xff] %vm1000_vm1, %v961_v12  ;;  %vm870_vm14 = vcmp.ge.f32.partialorder %v802_v9, 0.0  ;;  %v934_v19 = vmul.f32 0.2, %v802_v9  ;;  %v796_v21 = vpop.f32.mrb[31].mxu1 }
 0x122   : > { %1058 = vst.msk [vmem:[%s1473_s28 + $0x1c8] sm:$0xff] %vm1000_vm1, %v993_v13  ;;  %v966_v18 = vsel %vm838_vm13, %v674_v2, %v902_v8  ;;  %v677_v20 = vadd.f32 %v1268_v11, %v1464_v34  ;;  %vm836_vm15 = vcmp.ge.f32.partialorder %v666_v14, 0.0  ;;  %v900_v22 = vmul.f32 0.2, %v666_v14 }
 0x123   : > { %1031 = vst.msk [vmem:[%s1473_s28 + $0xf0] sm:$0xff] %vm1000_vm1, %v966_v18  ;;  %vm868_vm0 = vcmp.ge.f32.partialorder %v794_v15, 0.0  ;;  %v932_v23 = vmul.f32 0.2, %v794_v15  ;;  %v998_v24 = vsel %vm870_vm14, %v802_v9, %v934_v19  ;;  %v805_v26 = vadd.f32 %v1300_v16, %v1464_v34 }
 0x124   : > { %vm839_vm2 = vcmp.ge.f32.partialorder %v677_v20, 0.0  ;;  %v903_v25 = vmul.f32 0.2, %v677_v20  ;;  %1063 = vst.msk [vmem:[%s1473_s28 + $0x1f0] sm:$0xff] %vm1000_vm1, %v998_v24  ;;  %v964_v27 = vsel %vm836_vm15, %v666_v14, %v900_v22  ;;  %v669_v29 = vadd.f32 %v1464_v34, %v668_v17 }
 0x125   : > { %v996_v28 = vsel %vm868_vm0, %v794_v15, %v932_v23  ;;  %v797_v30 = vadd.f32 %v1464_v34, %v796_v21  ;;  %1029 = vst.msk [vmem:[%s1473_s28 + $0xe0] sm:$0xff] %vm1000_vm1, %v964_v27  ;;  %vm871_vm3 = vcmp.ge.f32.partialorder %v805_v26, 0.0  ;;  %v935_v32 = vmul.f32 0.2, %v805_v26 }
 0x126   : > { %1061 = vst.msk [vmem:[%s1473_s28 + $0x1e0] sm:$0xff] %vm1000_vm1, %v996_v28  ;;  %v967_v31 = vsel %vm839_vm2, %v677_v20, %v903_v25  ;;  %vm837_vm4 = vcmp.ge.f32.partialorder %v669_v29, 0.0  ;;  %v901_v33 = vmul.f32 0.2, %v669_v29 }
 0x127   : > { %1032 = vst.msk [vmem:[%s1473_s28 + $0xf8] sm:$0xff] %vm1000_vm1, %v967_v31  ;;  %vm869_vm5 = vcmp.ge.f32.partialorder %v797_v30, 0.0  ;;  %v933_v35 = vmul.f32 0.2, %v797_v30  ;;  %v999_v36 = vsel %vm871_vm3, %v805_v26, %v935_v32 }
 0x128   : > { %1064 = vst.msk [vmem:[%s1473_s28 + $0x1f8] sm:$0xff] %vm1000_vm1, %v999_v36  ;;  %v965_v37 = vsel %vm837_vm4, %v669_v29, %v901_v33 }
 0x129   : > { %v997_v38 = vsel %vm869_vm5, %v797_v30, %v933_v35  ;;  %1030 = vst.msk [vmem:[%s1473_s28 + $0xe8] sm:$0xff] %vm1000_vm1, %v965_v37 }
 0x12a   : > { %1062 = vst.msk [vmem:[%s1473_s28 + $0x1e8] sm:$0xff] %vm1000_vm1, %v997_v38 }
 0x12b PF: > { %s13_s12 = sadd.s32 1, %s1353_s12  }
 0x12c   : > { %p10_p4 = scmp.ge.s32.totalorder %s13_s12, 66  }
 0x12e   :  { %12 = sbr.rel (!%p10_p4) target bundleno = 1 (0x1), region = 62 }

</bundles_post_ra>
